<compile_context>
chip_gen: v6e
topology: v6e:2x2x1
jax: 0.10.0
libtpu: 0.0.40
codegen_flags: <defaults>
</compile_context>

<pallas_src>
import functools

import jax
import jax.numpy as jnp
from jax.experimental import pallas as pl
from jax.experimental.pallas import tpu as pltpu

# Derivative kernel taps (PyTorch conv1d is cross-correlation: no flip).
_COEFS = (-1.0, -1.0, -1.0, 0.0, 1.0, 1.0, 1.0)


def _round_up(x, m):
    return (x + m - 1) // m * m


def _combined_loss_kernel(yp_ref, yt_ref, out_ref, dpad_ref, acc_ref, *,
                          B, T, LPAD, B_TILE, alpha, beta, gamma,
                          high_dilation, mask_rows):
    pid = pl.program_id(0)

    @pl.when(pid == 0)
    def _init():
        # Zero the whole padded scratch once; only the (aligned) center is
        # rewritten per tile, so the pad lanes stay zero for every grid step.
        dpad_ref[...] = jnp.zeros_like(dpad_ref)
        acc_ref[0] = jnp.float32(0.0)

    # d = yp - yt, computed once (conv is linear).  Upcast in-kernel so bf16
    # inputs only move half the HBM bytes.
    d = yp_ref[...].astype(jnp.float32) - yt_ref[...].astype(jnp.float32)

    if mask_rows:
        # Last batch tile may extend past B; zero those rows (select, so any
        # garbage/NaN in the out-of-bounds region is discarded).
        row = jax.lax.broadcasted_iota(jnp.int32, (B_TILE, T), 0)
        d = jnp.where(pid * B_TILE + row < B, d, jnp.float32(0.0))

    # Aligned store into the zero-padded scratch (LPAD is a multiple of 128).
    dpad_ref[:, LPAD:LPAD + T] = d

    def conv(dil):
        # taps: (x[i+d] + x[i+2d] + x[i+3d]) - (x[i-d] + x[i-2d] + x[i-3d])
        pos = (dpad_ref[:, LPAD + dil:LPAD + dil + T]
               + dpad_ref[:, LPAD + 2 * dil:LPAD + 2 * dil + T]
               + dpad_ref[:, LPAD + 3 * dil:LPAD + 3 * dil + T])
        neg = (dpad_ref[:, LPAD - dil:LPAD - dil + T]
               + dpad_ref[:, LPAD - 2 * dil:LPAD - 2 * dil + T]
               + dpad_ref[:, LPAD - 3 * dil:LPAD - 3 * dil + T])
        return pos - neg

    c_low = conv(1)
    c_high = conv(high_dilation)

    # Fuse the three (already alpha/beta/gamma weighted) MSE terms into a
    # single cross-lane reduction per tile; accumulate the raw sum.
    fused = (alpha * (d * d)
             + beta * (c_low * c_low)
             + gamma * (c_high * c_high))
    acc_ref[0] += jnp.sum(fused)

    @pl.when(pid == pl.num_programs(0) - 1)
    def _finalize():
        out_ref[0, 0] = acc_ref[0] * (1.0 / (B * T))


def combined_loss(y_pred, y_true, *, alpha=0.5, beta=0.25, gamma=0.25,
                  high_dilation=2, block_b=None):
    # Accept (B, T) or (B, T, 1) like the PyTorch module.
    if y_pred.ndim == 3 and y_pred.shape[-1] == 1:
        y_pred = y_pred[..., 0]
        y_true = y_true[..., 0]
    assert y_pred.shape == y_true.shape and y_pred.ndim == 2
    B, T = y_pred.shape
    hd = max(1, int(high_dilation))
    reach = 3 * hd                      # max reach of the dilated kernel
    LPAD = _round_up(reach, 128)        # aligned pad (left and right)

    # --- pick a batch tile: multiple of 8 rows, ~4 MiB per input block ------
    itemsize = jnp.dtype(y_pred.dtype).itemsize
    target_block_bytes = 4 * 1024 * 1024
    rows = (target_block_bytes // max(1, T * itemsize)) // 8 * 8
    rows = max(8, min(256, rows))
    B_TILE = B if B <= rows else rows   # full-extent block if B is small
    if block_b is not None:             # test / tuning override
        B_TILE = min(int(block_b), B)
        assert B_TILE == B or B_TILE % 8 == 0
    grid_b = pl.cdiv(B, B_TILE)
    mask_rows = (B % B_TILE) != 0

    vmem_needed = (2 * 2 * B_TILE * T * itemsize          # 2 inputs, 2 buffers
                   + B_TILE * (T + 2 * LPAD) * 4)         # f32 scratch
    vmem_limit = int(min(max(vmem_needed + (8 << 20), 32 << 20), 48 << 20))

    kernel = functools.partial(
        _combined_loss_kernel, B=B, T=T, LPAD=LPAD, B_TILE=B_TILE,
        alpha=float(alpha), beta=float(beta), gamma=float(gamma),
        high_dilation=hd, mask_rows=mask_rows)

    out = pl.pallas_call(
        kernel,
        out_shape=jax.ShapeDtypeStruct((1, 1), jnp.float32),
        grid_spec=pltpu.PrefetchScalarGridSpec(
            num_scalar_prefetch=0,
            grid=(grid_b,),
            in_specs=[pl.BlockSpec((B_TILE, T), lambda b: (b, 0)),
                      pl.BlockSpec((B_TILE, T), lambda b: (b, 0))],
            out_specs=pl.BlockSpec(memory_space=pltpu.MemorySpace.SMEM),
            scratch_shapes=[pltpu.VMEM((B_TILE, T + 2 * LPAD), jnp.float32),
                            pltpu.SMEM((1,), jnp.float32)]),
        compiler_params=pltpu.CompilerParams(
            dimension_semantics=("arbitrary",),
            vmem_limit_bytes=vmem_limit),
    )(y_pred, y_true)
    return out[0, 0]


def _reference_loss(y_pred, y_true, *, alpha=0.5, beta=0.25, gamma=0.25,
                    high_dilation=2):
    """Pure-JAX reference matching the torch semantics (for a sanity check)."""
    w = jnp.asarray(_COEFS, jnp.float32)

    def conv1d(x, d):
        lhs = x[:, None, :].astype(jnp.float32)       # (B, 1, T)
        rhs = w[None, None, :]                        # (O=1, I=1, K=7)
        pad = ((7 - 1) * d + 1) // 2                  # = 3*d
        out = jax.lax.conv_general_dilated(
            lhs, rhs, window_strides=(1,), padding=[(pad, pad)],
            rhs_dilation=(d,), dimension_numbers=('NCH', 'OIH', 'NCH'))
        return out[:, 0, :]

    mse = jnp.mean((y_pred.astype(jnp.float32) - y_true.astype(jnp.float32)) ** 2)
    dl = jnp.mean((conv1d(y_pred, 1) - conv1d(y_true, 1)) ** 2)
    dh = jnp.mean((conv1d(y_pred, high_dilation)
                   - conv1d(y_true, high_dilation)) ** 2)
    return alpha * mse + beta * dl + gamma * dh


if __name__ == "__main__":
    key = jax.random.PRNGKey(0)
    k1, k2, k3, k4 = jax.random.split(key, 4)

    # Case 1: small, single full-array block (B < 8 -> full-extent block).
    B, T = 4, 128
    y_pred = jax.random.normal(k1, (B, T), jnp.float32)
    y_true = jax.random.normal(k2, (B, T), jnp.float32)
    loss = jax.block_until_ready(jax.jit(combined_loss)(y_pred, y_true))
    ref = _reference_loss(y_pred, y_true)
    assert jnp.allclose(loss, ref, rtol=2e-4, atol=1e-5), (loss, ref)

    # Case 2: forces a batch-tiled grid (block_b=8) + partial-tile masking.
    B2, T2 = 20, 256
    yp2 = jax.random.normal(k3, (B2, T2), jnp.float32)
    yt2 = jax.random.normal(k4, (B2, T2), jnp.float32)
    loss2 = jax.block_until_ready(
        jax.jit(functools.partial(combined_loss, block_b=8))(yp2, yt2))
    ref2 = _reference_loss(yp2, yt2)
    assert jnp.allclose(loss2, ref2, rtol=2e-4, atol=1e-5), (loss2, ref2)

    print("KERNEL_OK")
</pallas_src>

<mosaic_0001>
module attributes {stable_mosaic.version = 11 : i64} {
  func.func @_combined_loss_kernel(%arg0: i32, %arg1: memref<4x128xf32, #tpu.memory_space<vmem>>, %arg2: memref<4x128xf32, #tpu.memory_space<vmem>>, %arg3: memref<1x1xf32, #tpu.memory_space<smem>>, %arg4: memref<4x384xf32, #tpu.memory_space<vmem>>, %arg5: memref<1xf32, #tpu.memory_space<smem>>) attributes {dimension_semantics = [#tpu.dimension_semantics<arbitrary>], iteration_bounds = array<i64: 1>, scalar_prefetch = 0 : i64, scratch_operands = 2 : i64, tpu.core_type = #tpu.core_type<tc>, window_params = [{transform_indices = @transform_0, window_bounds = array<i64: 4, 128>}, {transform_indices = @transform_1, window_bounds = array<i64: 4, 128>}, {transform_indices = @transform_2, window_bounds = array<i64: 1, 1>}]} {
    %c0_i32 = arith.constant 0 : i32
    %0 = arith.cmpi eq, %arg0, %c0_i32 : i32
    %1 = arith.extui %0 : i1 to i32
    %c0_i32_0 = arith.constant 0 : i32
    %2 = arith.cmpi ne, %1, %c0_i32_0 : i32
    scf.if %2 {
      %cst_26 = arith.constant 0.000000e+00 : f32
      %50 = vector.broadcast %cst_26 : f32 to vector<4x384xf32>
      %c0_27 = arith.constant 0 : index
      %c0_28 = arith.constant 0 : index
      %51 = vector.load %arg4[%c0_27, %c0_28] : memref<4x384xf32, #tpu.memory_space<vmem>>, vector<4x384xf32>
      tpu.vector_store %arg4[%c0_27, %c0_28], %50 {strides = array<i32>} : memref<4x384xf32, #tpu.memory_space<vmem>>, vector<4x384xf32>,
      %cst_29 = arith.constant 0.000000e+00 : f32
      %c0_30 = arith.constant 0 : index
      %52 = memref.load %arg5[%c0_30] : memref<1xf32, #tpu.memory_space<smem>>
      memref.store %cst_29, %arg5[%c0_30] : memref<1xf32, #tpu.memory_space<smem>>
    } else {
    }
    %c0 = arith.constant 0 : index
    %c0_1 = arith.constant 0 : index
    %3 = vector.load %arg1[%c0, %c0_1] : memref<4x128xf32, #tpu.memory_space<vmem>>, vector<4x128xf32>
    %c0_2 = arith.constant 0 : index
    %c0_3 = arith.constant 0 : index
    %4 = vector.load %arg2[%c0_2, %c0_3] : memref<4x128xf32, #tpu.memory_space<vmem>>, vector<4x128xf32>
    %5 = arith.subf %3, %4 : vector<4x128xf32>
    %c0_4 = arith.constant 0 : index
    %c128 = arith.constant 128 : index
    %6 = vector.load %arg4[%c0_4, %c128] : memref<4x384xf32, #tpu.memory_space<vmem>>, vector<4x128xf32>
    tpu.vector_store %arg4[%c0_4, %c128], %5 {strides = array<i32>} : memref<4x384xf32, #tpu.memory_space<vmem>>, vector<4x128xf32>,
    %c0_5 = arith.constant 0 : index
    %c129 = arith.constant 129 : index
    %7 = vector.load %arg4[%c0_5, %c129] : memref<4x384xf32, #tpu.memory_space<vmem>>, vector<4x128xf32>
    %c0_6 = arith.constant 0 : index
    %c130 = arith.constant 130 : index
    %8 = vector.load %arg4[%c0_6, %c130] : memref<4x384xf32, #tpu.memory_space<vmem>>, vector<4x128xf32>
    %9 = arith.addf %7, %8 : vector<4x128xf32>
    %c0_7 = arith.constant 0 : index
    %c131 = arith.constant 131 : index
    %10 = vector.load %arg4[%c0_7, %c131] : memref<4x384xf32, #tpu.memory_space<vmem>>, vector<4x128xf32>
    %11 = arith.addf %9, %10 : vector<4x128xf32>
    %c0_8 = arith.constant 0 : index
    %c127 = arith.constant 127 : index
    %12 = vector.load %arg4[%c0_8, %c127] : memref<4x384xf32, #tpu.memory_space<vmem>>, vector<4x128xf32>
    %c0_9 = arith.constant 0 : index
    %c126 = arith.constant 126 : index
    %13 = vector.load %arg4[%c0_9, %c126] : memref<4x384xf32, #tpu.memory_space<vmem>>, vector<4x128xf32>
    %14 = arith.addf %12, %13 : vector<4x128xf32>
    %c0_10 = arith.constant 0 : index
    %c125 = arith.constant 125 : index
    %15 = vector.load %arg4[%c0_10, %c125] : memref<4x384xf32, #tpu.memory_space<vmem>>, vector<4x128xf32>
    %16 = arith.addf %14, %15 : vector<4x128xf32>
    %17 = arith.subf %11, %16 : vector<4x128xf32>
    %c0_11 = arith.constant 0 : index
    %c130_12 = arith.constant 130 : index
    %18 = vector.load %arg4[%c0_11, %c130_12] : memref<4x384xf32, #tpu.memory_space<vmem>>, vector<4x128xf32>
    %c0_13 = arith.constant 0 : index
    %c132 = arith.constant 132 : index
    %19 = vector.load %arg4[%c0_13, %c132] : memref<4x384xf32, #tpu.memory_space<vmem>>, vector<4x128xf32>
    %20 = arith.addf %18, %19 : vector<4x128xf32>
    %c0_14 = arith.constant 0 : index
    %c134 = arith.constant 134 : index
    %21 = vector.load %arg4[%c0_14, %c134] : memref<4x384xf32, #tpu.memory_space<vmem>>, vector<4x128xf32>
    %22 = arith.addf %20, %21 : vector<4x128xf32>
    %c0_15 = arith.constant 0 : index
    %c126_16 = arith.constant 126 : index
    %23 = vector.load %arg4[%c0_15, %c126_16] : memref<4x384xf32, #tpu.memory_space<vmem>>, vector<4x128xf32>
    %c0_17 = arith.constant 0 : index
    %c124 = arith.constant 124 : index
    %24 = vector.load %arg4[%c0_17, %c124] : memref<4x384xf32, #tpu.memory_space<vmem>>, vector<4x128xf32>
    %25 = arith.addf %23, %24 : vector<4x128xf32>
    %c0_18 = arith.constant 0 : index
    %c122 = arith.constant 122 : index
    %26 = vector.load %arg4[%c0_18, %c122] : memref<4x384xf32, #tpu.memory_space<vmem>>, vector<4x128xf32>
    %27 = arith.addf %25, %26 : vector<4x128xf32>
    %28 = arith.subf %22, %27 : vector<4x128xf32>
    %29 = arith.mulf %5, %5 : vector<4x128xf32>
    %cst = arith.constant 5.000000e-01 : f32
    %30 = vector.broadcast %cst : f32 to vector<4x128xf32>
    %31 = arith.mulf %30, %29 : vector<4x128xf32>
    %32 = arith.mulf %17, %17 : vector<4x128xf32>
    %cst_19 = arith.constant 2.500000e-01 : f32
    %33 = vector.broadcast %cst_19 : f32 to vector<4x128xf32>
    %34 = arith.mulf %33, %32 : vector<4x128xf32>
    %35 = arith.addf %31, %34 : vector<4x128xf32>
    %36 = arith.mulf %28, %28 : vector<4x128xf32>
    %cst_20 = arith.constant 2.500000e-01 : f32
    %37 = vector.broadcast %cst_20 : f32 to vector<4x128xf32>
    %38 = arith.mulf %37, %36 : vector<4x128xf32>
    %39 = arith.addf %35, %38 : vector<4x128xf32>
    %c0_21 = arith.constant 0 : index
    %40 = memref.load %arg5[%c0_21] : memref<1xf32, #tpu.memory_space<smem>>
    %41 = vector.shape_cast %39 : vector<4x128xf32> to vector<1x4x128xf32>
    %cst_22 = arith.constant dense<0.000000e+00> : vector<1xf32>
    %42 = vector.multi_reduction <add>, %41, %cst_22 [1, 2] : vector<1x4x128xf32> to vector<1xf32>
    %43 = vector.shape_cast %42 : vector<1xf32> to vector<1x1x1xf32>
    %44 = vector.extract %43[0, 0, 0] : f32 from vector<1x1x1xf32>
    %45 = arith.addf %40, %44 : f32
    %c0_23 = arith.constant 0 : index
    %46 = memref.load %arg5[%c0_23] : memref<1xf32, #tpu.memory_space<smem>>
    memref.store %45, %arg5[%c0_23] : memref<1xf32, #tpu.memory_space<smem>>
    %c0_i32_24 = arith.constant 0 : i32
    %47 = arith.cmpi eq, %arg0, %c0_i32_24 : i32
    %48 = arith.extui %47 : i1 to i32
    %c0_i32_25 = arith.constant 0 : i32
    %49 = arith.cmpi ne, %48, %c0_i32_25 : i32
    scf.if %49 {
      %c0_26 = arith.constant 0 : index
      %50 = memref.load %arg5[%c0_26] : memref<1xf32, #tpu.memory_space<smem>>
      %cst_27 = arith.constant 0.001953125 : f32
      %51 = arith.mulf %50, %cst_27 : f32
      %c0_28 = arith.constant 0 : index
      %c0_29 = arith.constant 0 : index
      %52 = memref.load %arg3[%c0_28, %c0_29] : memref<1x1xf32, #tpu.memory_space<smem>>
      memref.store %51, %arg3[%c0_28, %c0_29] : memref<1x1xf32, #tpu.memory_space<smem>>
    } else {
    }
    return
  }
  func.func @transform_0(%arg0: i32) -> (i32, i32) {
    %c0_i32 = arith.constant 0 : i32
    %c0_i32_0 = arith.constant 0 : i32
    return %arg0, %c0_i32 : i32, i32
  }
  func.func @transform_1(%arg0: i32) -> (i32, i32) {
    %c0_i32 = arith.constant 0 : i32
    %c0_i32_0 = arith.constant 0 : i32
    return %arg0, %c0_i32 : i32, i32
  }
  func.func @transform_2(%arg0: i32) -> (i32, i32) {
    %c0_i32 = arith.constant 0 : i32
    %c0_i32_0 = arith.constant 0 : i32
    %c0_i32_1 = arith.constant 0 : i32
    return %c0_i32, %c0_i32_0 : i32, i32
  }
}

</mosaic_0001>

<bundles_post_ra>
// kernel: combined_loss.1
= control target key start
LH: loop header
LB: loop body
LE: loop exit
PB: predicated region body
PF: predicated region fallthrough
CT: control target
= control target key end

     0   :  { %7 = vsyncpa [#allocation5], 0  ;;  %s290_s0 = inlined_call_operand.hbm [shape: f32[4,128], index: 0, kind: input, shape index: {}]   ;;  %s291_s1 = inlined_call_operand.hbm [shape: f32[4,128], index: 1, kind: input, shape index: {}]   ;;  %s292_s2 = inlined_call_operand.hbm [shape: f32[1,1], index: 2, kind: output, shape index: {}]  }
   0x1   :  { %8 = vsyncpa [#allocation8], 0 }
   0x2   :  { %9 = vsyncpa [#allocation6], 0  ;;  %s237_s9 = smov [#allocation4]   ;;  %s238_s11 = smov [#allocation7]  }
   0x3   :  { %s16_s10 = sshll.u32 %s237_s9, 4  ;;  %s26_s12 = sshll.u32 %s238_s11, 4  ;;  %s17_s10 = int_to_ptr.vmem [resolvable:$true] %s16_s10  ;;  %s27_s12 = int_to_ptr.vmem [resolvable:$true] %s26_s12 }
   0x4   :  { %s191_s13 = scalar_lea.vmem %s17_s10, 64  ;;  %p196_p1 = scmp.lt.s32.totalorder %s17_s10, %s17_s10 }
   0x5   :  { %p192_p0 = scmp.ne.s32.totalorder %s17_s10, %s191_s13  ;;  %p197_p2 = scmp.lt.s32.totalorder %s191_s13, %s191_s13 }
   0x7   :  { %p198_p3 = por %p197_p2, %p196_p1 }
   0x9   :  { %p199_p4 = pnand %p198_p3, %p192_p0 }
   0xb   :  { %202 = shalt.err (!%p199_p4)
}
   0xc   :  { %19 = dma.hbm_to_vmem [thread:$0]  %s290_s0, 64, %s17_s10, [#allocation5]  }
   0xd   :  { %s211_s16 = scalar_lea.vmem %s27_s12, 64  ;;  %p216_p6 = scmp.lt.s32.totalorder %s27_s12, %s27_s12 }
   0xe   :  { %p212_p5 = scmp.ne.s32.totalorder %s27_s12, %s211_s16  ;;  %p217_p7 = scmp.lt.s32.totalorder %s211_s16, %s211_s16 }
  0x10   :  { %p218_p8 = por %p217_p7, %p216_p6 }
  0x12   :  { %p219_p9 = pnand %p218_p8, %p212_p5 }
  0x14   :  { %222 = shalt.err (!%p219_p9)
}
  0x15   :  { %29 = dma.hbm_to_vmem [thread:$0]  %s291_s1, 64, %s27_s12, [#allocation8]  }
  0x16   :  { %231 = dma.done.wait [#allocation5], 64  }
  0x17   :  { %232 = vsyncadd [#allocation5], 4294967232 }
  0x18   :  { %233 = dma.done.wait [#allocation8], 64  }
  0x19   :  { %234 = vsyncadd [#allocation8], 4294967232  ;;  %v239_v0 = vmov 0.0   ;;  %v44_v1 = vld [vmem:[#allocation4] sm:$0xf]  ;;  %s240_s0 = smov 1  }
  0x1a   :  { %40 = vst [vmem:[#allocation2] sm:$0xff] %v239_v0  ;;  %41 = vst [vmem:[#allocation2 + $0x8] sm:$0xf] %v239_v0  ;;  %v45_v2 = vld [vmem:[#allocation7] sm:$0xf]  ;;  %s241_s19 = smov 4  }
  0x1b   :  { %v268_v3 = vsub.f32 %v44_v1, %v45_v2  ;;  %s242_s1 = smov 2   ;;  %s243_s20 = smov 127   ;;  %vm69_vm0 = vcmask 7168   ;;  %vm76_vm1 = vcmask 15360   ;;  %vm99_vm2 = vcmask 31744  }
  0x1c   :  { %s244_s21 = smov 126   ;;  %s245_s22 = smov 124   ;;  %vm53_vm3 = vcmask 1039360   ;;  %vm60_vm4 = vcmask 1031168   ;;  %vm91_vm5 = vcmask 1014784   ;;  %vm135_vm6 = vcmask 1043456  }
  0x1d   :  { %47 = vst [vmem:[#allocation2 + $0x4] sm:$0xf] %v268_v3  ;;  %v110_v46 = vmul.f32 %v268_v3, %v268_v3  ;;  %s246_s25 = smov [#allocation9]  }
  0x1f   :  { %v111_v48 = vmul.f32 0.5, %v110_v46 }
  0x24   :  { %v64_v4 = vld [vmem:[#allocation2] sm:$0xff] }
  0x25   :  { %66 = vrot.lane.b32.xlu0 %v64_v4, %s240_s0  ;;  %96 = vrot.lane.b32.xlu1 %v64_v4, %s241_s19  ;;  %v48_v5 = vld [vmem:[#allocation2 + $0x4] sm:$0xff] }
  0x29   :  { %73 = vrot.lane.b32.xlu0 %v64_v4, %s242_s1  ;;  %50 = vrot.lane.b32.xlu1 %v48_v5, %s243_s20 }
  0x2d   :  { %57 = vrot.lane.b32.xlu0 %v48_v5, %s244_s21 }
  0x31   :  { %88 = vrot.lane.b32.xlu0 %v48_v5, %s245_s22 }
  0x97   :  { %v67_v6 = vpop.permute.xlu0 %66  ;;  %v97_v8 = vpop.permute.xlu1 %96 }
  0x98   :  { %v68_v7 = vrot.slane %v67_v6, 4  ;;  %v98_v12 = vrot.slane %v97_v8, 4 }
  0x9a   :  { %v70_v9 = vsel %vm69_vm0, %v68_v7, %v67_v6  ;;  %v100_v17 = vsel %vm99_vm2, %v98_v12, %v97_v8 }
  0x9b   :  { %v74_v10 = vpop.permute.xlu0 %73  ;;  %v72_v13 = vadd.f32 %v70_v9, %v64_v4  ;;  %v51_v19 = vpop.permute.xlu1 %50 }
  0x9c   :  { %v75_v11 = vrot.slane %v74_v10, 4  ;;  %v52_v21 = vrot.slane %v51_v19, 4 }
  0x9e   :  { %v77_v14 = vsel %vm76_vm1, %v75_v11, %v74_v10  ;;  %v54_v23 = vsel %vm53_vm3, %v51_v19, %v52_v21 }
  0x9f   :  { %v79_v15 = vadd.f32 %v77_v14, %v72_v13  ;;  %v95_v16 = vadd.f32 %v77_v14, %v64_v4  ;;  %v58_v20 = vpop.permute.xlu0 %57  ;;  %v56_v25 = vadd.f32 %v54_v23, %v48_v5 }
  0xa0   :  { %v59_v22 = vrot.slane %v58_v20, 4 }
  0xa1   :  { %81 = vrot.lane.b32.xlu1 %v79_v15, %s242_s1  ;;  %v102_v18 = vadd.f32 %v100_v17, %v95_v16 }
  0xa2   :  { %v61_v26 = vsel %vm60_vm4, %v58_v20, %v59_v22 }
  0xa3   :  { %v89_v24 = vpop.permute.xlu0 %88  ;;  %v87_v30 = vadd.f32 %v61_v26, %v48_v5  ;;  %v63_v31 = vadd.f32 %v61_v26, %v56_v25 }
  0xa4   :  { %v90_v27 = vrot.slane %v89_v24, 4 }
  0xa5   :  { %104 = vrot.lane.b32.xlu1 %v102_v18, %s241_s19 }
  0xa6   :  { %v92_v32 = vsel %vm91_vm5, %v89_v24, %v90_v27 }
  0xa7   :  { %v94_v37 = vadd.f32 %v92_v32, %v87_v30 }
 0x113   :  { %v82_v28 = vpop.permute.xlu1 %81 }
 0x114   :  { %v83_v29 = vrot.slane %v82_v28, 4 }
 0x116   :  { %v84_v33 = vsel %vm76_vm1, %v82_v28, %v83_v29 }
 0x117   :  { %v86_v34 = vsub.f32 %v63_v31, %v84_v33  ;;  %v105_v35 = vpop.permute.xlu1 %104 }
 0x118   :  { %v106_v36 = vrot.slane %v105_v35, 4 }
 0x119   :  { %v112_v38 = vmul.f32 %v86_v34, %v86_v34 }
 0x11a   :  { %v107_v39 = vsel %vm99_vm2, %v105_v35, %v106_v36 }
 0x11b   :  { %v113_v40 = vmul.f32 0.25, %v112_v38  ;;  %v109_v41 = vsub.f32 %v94_v37, %v107_v39 }
 0x11d   :  { %v123_v42 = vmul.f32 %v109_v41, %v109_v41  ;;  %116 = vrot.lane.b32.xlu0 %v113_v40, %s243_s20  ;;  %v115_v43 = vcombine.high %v113_v40, %v113_v40 }
 0x11f   :  { %v124_v44 = vmul.f32 0.25, %v123_v42  ;;  %118 = vrot.lane.b32.xlu1 %v115_v43, %s243_s20 }
 0x121   :  { %127 = vrot.lane.b32.xlu0 %v124_v44, %s244_s21  ;;  %v126_v45 = vcombine.high %v124_v44, %v124_v44 }
 0x123   :  { %129 = vrot.lane.b32.xlu1 %v126_v45, %s244_s21 }
 0x18f   :  { %v117_v47 = vpop.permute.xlu0 %116 }
 0x191   :  { %v119_v49 = vpop.permute.xlu1 %118 }
 0x192   :  { %v120_v50 = vsel %vm53_vm3, %v117_v47, %v119_v49 }
 0x193   :  { %v122_v51 = vadd.f32 %v120_v50, %v111_v48  ;;  %v128_v52 = vpop.permute.xlu0 %127 }
 0x195   :  { %v130_v53 = vpop.permute.xlu1 %129 }
 0x196   :  { %v131_v54 = vsel %vm60_vm4, %v128_v52, %v130_v53 }
 0x197   :  { %v133_v55 = vadd.f32 %v131_v54, %v122_v51 }
 0x199   :  { %v136_v56 = vsel %vm135_vm6, %v133_v55, 0.0 }
 0x19a   :  { %137 = vadd.xlane.f32.xlu0 %v136_v56 }
 0x223   :  { %v138_v57 = vpop.xlane.xlu0 %137 }
 0x224   :  { %v139_v58 = vrot.slane %v138_v57, 4 }
 0x226   :  { %v140_v59 = vadd.f32 %v139_v58, %v138_v57 }
 0x228   :  { %v141_v60 = vrot.slane %v140_v59, 2 }
 0x22a   :  { %v142_v61 = vadd.f32 %v141_v60, %v140_v59 }
 0x22c   :  { %v143_v62 = vrot.slane %v142_v61, 1 }
 0x22e   :  { %v144_v63 = vadd.f32 %v143_v62, %v142_v61 }
 0x230   :  { %171 = vpush %v144_v63 }
 0x261   :  { %s172_s23 = spop %171 }
 0x262   :  { %s153_s24 = smul.f32 0.001953125, %s172_s23 }
 0x264   :  { %155 = sst [smem:[#allocation9]] %s153_s24 }
 0x265   :  { %163 = dma.smem_to_hbm %s246_s25, 16, %s292_s2, [#allocation6]  }
 0x266   :  { %235 = dma.done.wait [#allocation6], 16  }
 0x267   :  { %236 = vsyncadd [#allocation6], 4294967280 }
 0x268   :  { %167 = sfence }
 0x269   :  { %168 = vsyncpa [#allocation5], 1 }
 0x26a   :  { %169 = vsyncpa [#allocation8], 1 }
 0x26b   :  { %170 = vsyncpa [#allocation6], 1 }

</bundles_post_ra>
